<compile_context>
chip_gen: v5e
topology: v5e:2x2
jax: 0.10.0
libtpu: 0.0.40
codegen_flags: <defaults>
</compile_context>

<pallas_src>
import functools

import jax
import jax.numpy as jnp
from jax.experimental import pallas as pl
from jax.experimental.pallas import tpu as pltpu

_LANES = 128
_SUBLANES = 8


# ---------------------------------------------------------------------------
# Pallas kernels
# ---------------------------------------------------------------------------
def _disc_kernel(x_ref, w1_ref, b1_ref, w2_ref, b2_ref, out_ref):
    # x_ref : (tb, D)   w1_ref: (D, H)   b1_ref: (1, H) f32
    # w2_ref: (1, H) f32   b2_ref: (1,) f32 in SMEM   out_ref: (tb, 1) f32
    h = jnp.dot(x_ref[...], w1_ref[...], preferred_element_type=jnp.float32)
    h = jnp.maximum(h + b1_ref[...], 0.0)                       # ReLU on the VPU
    # Second layer as VPU mul + XLU lane reduce (avoids an N=1 MXU matmul).
    out = jnp.sum(h * w2_ref[...], axis=-1, keepdims=True) + b2_ref[0]
    out_ref[...] = out.astype(out_ref.dtype)


def _disc_kernel_with_h(x_ref, w1_ref, b1_ref, w2_ref, b2_ref, out_ref, h_ref):
    h = jnp.dot(x_ref[...], w1_ref[...], preferred_element_type=jnp.float32)
    h = jnp.maximum(h + b1_ref[...], 0.0)
    h_ref[...] = h.astype(h_ref.dtype)
    out = jnp.sum(h * w2_ref[...], axis=-1, keepdims=True) + b2_ref[0]
    out_ref[...] = out.astype(out_ref.dtype)


# ---------------------------------------------------------------------------
# Wrapper
# ---------------------------------------------------------------------------
def _round_up(n, m):
    return -(-n // m) * m


def _physical_vmem_bytes():
    try:
        return int(pltpu.get_tpu_info().vmem_capacity_bytes)
    except Exception:
        return 64 << 20  # conservative: v7x per-TensorCore VMEM


@functools.partial(jax.jit, static_argnames=("return_h", "tile_b", "compute_dtype"))
def linear_discriminator_forward(x, w1, b1, w2_row, b2, return_h=False,
                                 tile_b=1024, compute_dtype=jnp.bfloat16):
    """Forward pass.

    x:      (B, dim)        float32
    w1:     (dim, hidden)   spectral-normalized main.weight, pre-transposed
    b1:     (hidden,)
    w2_row: (1, hidden)     spectral-normalized fc.weight (row layout)
    b2:     (1,)

    compute_dtype controls the x/W1 streaming + MXU dtype (accumulation and the
    epilogue stay f32).  With return_h=True, h is emitted in compute_dtype.
    tile_b is auto-shrunk to fit the per-generation VMEM budget.
    """
    B, D = x.shape
    H = w1.shape[1]
    in_isz = jnp.dtype(compute_dtype).itemsize

    # ---- batch tile size -------------------------------------------------
    tb = min(tile_b, B)
    # v7x megacore: ensure at least 2 batch tiles when there is enough work.
    if tb == B and B >= 16:
        tb = -(-B // 2)
    # Align tile rows to sublane granularity unless the tile spans the full
    # batch (a full-extent block dim is always legal).
    if tb != B:
        tb = _round_up(tb, _SUBLANES)

    def est_bytes(t):
        e = 2 * t * D * in_isz                      # x tile (double-buffered)
        e += 2 * t * 4                              # out column tile
        if return_h:
            e += 2 * t * H * in_isz                 # h tile
        e += 2 * D * H * in_isz                     # W1 (2 buffers even if invariant)
        e += 2 * 2 * _SUBLANES * _round_up(H, _LANES) * 4   # b1 + w2 row tiles
        return e

    budget = _physical_vmem_bytes() * 4 // 5
    while est_bytes(tb) + (4 << 20) > budget and tb > _SUBLANES:
        tb = max(_SUBLANES, _round_up(tb // 2, _SUBLANES))
    # TODO(synk): for very large dim*hidden_dim, W1 cannot be fully VMEM
    # resident; a K-tiled grid over `dim` with an f32 accumulator is needed.
    vmem_limit = int(min(budget, max(est_bytes(tb) + (4 << 20), 16 << 20)))

    grid = (pl.cdiv(B, tb),)

    # ---- operand casts / layouts (no zero-padding of x) -------------------
    xp = x.astype(compute_dtype)
    w1p = w1.astype(compute_dtype)
    b1p = b1.reshape(1, H).astype(jnp.float32)
    w2p = w2_row.reshape(1, H).astype(jnp.float32)
    b2s = b2.reshape(1).astype(jnp.float32)

    in_specs = [
        pl.BlockSpec((tb, D), lambda i: (i, 0)),            # x: streamed per tile
        pl.BlockSpec((D, H), lambda i: (0, 0)),              # W1: resident
        pl.BlockSpec((1, H), lambda i: (0, 0)),               # b1: resident
        pl.BlockSpec((1, H), lambda i: (0, 0)),                # w2 row: resident
        pl.BlockSpec(memory_space=pltpu.MemorySpace.SMEM),      # b2: SMEM scalar
    ]
    out_col_spec = pl.BlockSpec((tb, 1), lambda i: (i, 0))

    flops = 2 * B * D * H + 3 * B * H
    bytes_accessed = (B * D * in_isz + D * H * in_isz + 2 * H * 4 + B * 4
                      + (B * H * in_isz if return_h else 0))
    cost = pl.CostEstimate(flops=flops, transcendentals=0,
                           bytes_accessed=bytes_accessed)
    compiler_params = pltpu.CompilerParams(
        dimension_semantics=("parallel",), vmem_limit_bytes=vmem_limit)

    if return_h:
        out, h = pl.pallas_call(
            _disc_kernel_with_h,
            out_shape=(
                jax.ShapeDtypeStruct((B, 1), jnp.float32),
                jax.ShapeDtypeStruct((B, H), compute_dtype),
            ),
            grid=grid,
            in_specs=in_specs,
            out_specs=(out_col_spec, pl.BlockSpec((tb, H), lambda i: (i, 0))),
            compiler_params=compiler_params,
            cost_estimate=cost,
        )(xp, w1p, b1p, w2p, b2s)
        return out, h

    out = pl.pallas_call(
        _disc_kernel,
        out_shape=jax.ShapeDtypeStruct((B, 1), jnp.float32),
        grid=grid,
        in_specs=in_specs,
        out_specs=out_col_spec,
        compiler_params=compiler_params,
        cost_estimate=cost,
    )(xp, w1p, b1p, w2p, b2s)
    return out


# ---------------------------------------------------------------------------
# Parameter construction (deterministic, mirrors the PyTorch __init__)
# ---------------------------------------------------------------------------
def _xavier_uniform(key, out_features, in_features, gain=1.0):
    bound = gain * jnp.sqrt(6.0 / (in_features + out_features))
    return jax.random.uniform(key, (out_features, in_features),
                              minval=-bound, maxval=bound, dtype=jnp.float32)


def _linear_bias_init(key, out_features, in_features):
    # PyTorch nn.Linear default bias init: U(-1/sqrt(fan_in), 1/sqrt(fan_in))
    bound = 1.0 / jnp.sqrt(jnp.float32(in_features))
    return jax.random.uniform(key, (out_features,),
                              minval=-bound, maxval=bound, dtype=jnp.float32)


def _spectral_norm(weight, key, eps=1e-12):
    """One power iteration (PyTorch spectral_norm default), deterministic u init.

    TODO(synk): PyTorch carries a persistent `u` buffer across forward passes;
    here `u` is re-initialized per call, so sigma matches a freshly-initialized
    module rather than a trained model's running estimate.
    """
    u = jax.random.normal(key, (weight.shape[0],), dtype=jnp.float32)
    u = u / jnp.maximum(jnp.linalg.norm(u), eps)
    v = weight.T @ u
    v = v / jnp.maximum(jnp.linalg.norm(v), eps)
    u = weight @ v
    u = u / jnp.maximum(jnp.linalg.norm(u), eps)
    sigma = u @ (weight @ v)
    return weight / sigma


def make_params(dim, hidden_dim, use_sn=True, seed=0):
    keys = jax.random.split(jax.random.PRNGKey(seed), 6)
    w1 = _xavier_uniform(keys[0], hidden_dim, dim)     # (hidden, dim)
    b1 = _linear_bias_init(keys[1], hidden_dim, dim)
    w2 = _xavier_uniform(keys[2], 1, hidden_dim)       # (1, hidden)
    b2 = _linear_bias_init(keys[3], 1, hidden_dim)
    if use_sn:
        w1 = _spectral_norm(w1, keys[4])
        w2 = _spectral_norm(w2, keys[5])
    # Layouts for the kernel: w1 -> (dim, hidden), w2 -> (1, hidden) row.
    return w1.T, b1, w2, b2


# ---------------------------------------------------------------------------
if __name__ == "__main__":
    dim, hidden_dim, batch = 32, 64, 8

    w1, b1, w2_row, b2 = make_params(dim, hidden_dim, use_sn=True, seed=0)
    x = jax.random.normal(jax.random.PRNGKey(0), (batch, dim), dtype=jnp.float32)

    # f32 streaming path: tight correctness check against the pure-JAX reference.
    out_only = linear_discriminator_forward(x, w1, b1, w2_row, b2,
                                            compute_dtype=jnp.float32)
    out, h = linear_discriminator_forward(x, w1, b1, w2_row, b2, return_h=True,
                                          compute_dtype=jnp.float32)
    jax.block_until_ready((out_only, out, h))

    h_ref = jnp.maximum(x @ w1 + b1, 0.0)
    out_ref = h_ref @ w2_row.T + b2

    assert out_only.shape == (batch, 1) and out.shape == (batch, 1)
    assert h.shape == (batch, hidden_dim)
    assert jnp.allclose(out_only, out_ref, atol=1e-5, rtol=1e-5)
    assert jnp.allclose(out, out_ref, atol=1e-5, rtol=1e-5)
    assert jnp.allclose(h, h_ref, atol=1e-5, rtol=1e-5)

    # Default bf16 streaming path (half the HBM reads, full-rate MXU) — looser check.
    out_bf16 = jax.block_until_ready(
        linear_discriminator_forward(x, w1, b1, w2_row, b2))
    assert out_bf16.shape == (batch, 1)
    assert jnp.allclose(out_bf16, out_ref, atol=1e-1, rtol=1e-1)

    print("KERNEL_OK")
</pallas_src>

<mosaic_0001>
module attributes {stable_mosaic.version = 11 : i64} {
  func.func @_disc_kernel(%arg0: i32, %arg1: memref<8x32xf32, #tpu.memory_space<vmem>>, %arg2: memref<32x64xf32, #tpu.memory_space<vmem>>, %arg3: memref<1x64xf32, #tpu.memory_space<vmem>>, %arg4: memref<1x64xf32, #tpu.memory_space<vmem>>, %arg5: memref<1xf32, #tpu.memory_space<smem>>, %arg6: memref<8x1xf32, #tpu.memory_space<vmem>>) attributes {dimension_semantics = [#tpu.dimension_semantics<parallel>], iteration_bounds = array<i64: 1>, scalar_prefetch = 0 : i64, scratch_operands = 0 : i64, tpu.core_type = #tpu.core_type<tc>, window_params = [{transform_indices = @transform_0, window_bounds = array<i64: 8, 32>}, {pipeline_mode = #tpu.pipeline_mode<synchronous>, transform_indices = @transform_1, window_bounds = array<i64: 32, 64>}, {pipeline_mode = #tpu.pipeline_mode<synchronous>, transform_indices = @transform_2, window_bounds = array<i64: 1, 64>}, {pipeline_mode = #tpu.pipeline_mode<synchronous>, transform_indices = @transform_3, window_bounds = array<i64: 1, 64>}, {transform_indices = @transform_4, window_bounds = array<i64: 1>}, {transform_indices = @transform_5, window_bounds = array<i64: 8, 1>}]} {
    %c0 = arith.constant 0 : index
    %c0_0 = arith.constant 0 : index
    %0 = vector.load %arg1[%c0, %c0_0] : memref<8x32xf32, #tpu.memory_space<vmem>>, vector<8x32xf32>
    %c0_1 = arith.constant 0 : index
    %c0_2 = arith.constant 0 : index
    %1 = vector.load %arg2[%c0_1, %c0_2] : memref<32x64xf32, #tpu.memory_space<vmem>>, vector<32x64xf32>
    %cst = arith.constant dense<0.000000e+00> : vector<8x64xf32>
    %2 = tpu.matmul %0, %1, %cst {dimension_numbers = #tpu.dot_dimension_numbers<[1], [0], [0], [1], [0, 0, 1, 1], [], []>} : vector<8x32xf32>, vector<32x64xf32>, vector<8x64xf32> -> vector<8x64xf32>
    %c0_3 = arith.constant 0 : index
    %c0_4 = arith.constant 0 : index
    %3 = vector.load %arg3[%c0_3, %c0_4] : memref<1x64xf32, #tpu.memory_space<vmem>>, vector<1x64xf32>
    %4 = vector.broadcast %3 : vector<1x64xf32> to vector<8x64xf32>
    %5 = arith.addf %2, %4 : vector<8x64xf32>
    %cst_5 = arith.constant 0.000000e+00 : f32
    %6 = vector.broadcast %cst_5 : f32 to vector<8x64xf32>
    %7 = arith.maximumf %5, %6 : vector<8x64xf32>
    %c0_6 = arith.constant 0 : index
    %c0_7 = arith.constant 0 : index
    %8 = vector.load %arg4[%c0_6, %c0_7] : memref<1x64xf32, #tpu.memory_space<vmem>>, vector<1x64xf32>
    %9 = vector.broadcast %8 : vector<1x64xf32> to vector<8x64xf32>
    %10 = arith.mulf %7, %9 : vector<8x64xf32>
    %cst_8 = arith.constant dense<0.000000e+00> : vector<8xf32>
    %11 = vector.multi_reduction <add>, %10, %cst_8 [1] : vector<8x64xf32> to vector<8xf32>
    %12 = vector.shape_cast %11 : vector<8xf32> to vector<8x1xf32>
    %c0_9 = arith.constant 0 : index
    %13 = memref.load %arg5[%c0_9] : memref<1xf32, #tpu.memory_space<smem>>
    %14 = vector.broadcast %13 : f32 to vector<8x1xf32>
    %15 = arith.addf %12, %14 : vector<8x1xf32>
    %c0_10 = arith.constant 0 : index
    %c0_11 = arith.constant 0 : index
    %16 = vector.load %arg6[%c0_10, %c0_11] : memref<8x1xf32, #tpu.memory_space<vmem>>, vector<8x1xf32>
    tpu.vector_store %arg6[%c0_10, %c0_11], %15 {strides = array<i32>} : memref<8x1xf32, #tpu.memory_space<vmem>>, vector<8x1xf32>,
    return
  }
  func.func @transform_0(%arg0: i32) -> (i32, i32) {
    %c0_i32 = arith.constant 0 : i32
    %c0_i32_0 = arith.constant 0 : i32
    return %arg0, %c0_i32 : i32, i32
  }
  func.func @transform_1(%arg0: i32) -> (i32, i32) {
    %c0_i32 = arith.constant 0 : i32
    %c0_i32_0 = arith.constant 0 : i32
    %c0_i32_1 = arith.constant 0 : i32
    return %c0_i32, %c0_i32_0 : i32, i32
  }
  func.func @transform_2(%arg0: i32) -> (i32, i32) {
    %c0_i32 = arith.constant 0 : i32
    %c0_i32_0 = arith.constant 0 : i32
    %c0_i32_1 = arith.constant 0 : i32
    return %c0_i32, %c0_i32_0 : i32, i32
  }
  func.func @transform_3(%arg0: i32) -> (i32, i32) {
    %c0_i32 = arith.constant 0 : i32
    %c0_i32_0 = arith.constant 0 : i32
    %c0_i32_1 = arith.constant 0 : i32
    return %c0_i32, %c0_i32_0 : i32, i32
  }
  func.func @transform_4(%arg0: i32) -> i32 {
    %c0_i32 = arith.constant 0 : i32
    %c0_i32_0 = arith.constant 0 : i32
    return %c0_i32 : i32
  }
  func.func @transform_5(%arg0: i32) -> (i32, i32) {
    %c0_i32 = arith.constant 0 : i32
    %c0_i32_0 = arith.constant 0 : i32
    return %arg0, %c0_i32 : i32, i32
  }
}

</mosaic_0001>

<bundles_post_ra>
// kernel: linear_discriminator_forward.1
= control target key start
LH: loop header
LB: loop body
LE: loop exit
PB: predicated region body
PF: predicated region fallthrough
CT: control target
= control target key end

     0   :  { %11 = vsyncpa [#allocation4], 0  ;;  %s216_s0 = inlined_call_operand.hbm [shape: f32[8,32], index: 0, kind: input, shape index: {}]   ;;  %s217_s1 = inlined_call_operand.hbm [shape: f32[32,64], index: 1, kind: input, shape index: {}]   ;;  %s218_s2 = inlined_call_operand.vmem [shape: f32[1,64], index: 2, kind: input, shape index: {}]   ;;  %s219_s3 = inlined_call_operand.vmem [shape: f32[1,64], index: 3, kind: input, shape index: {}]   ;;  %s220_s4 = inlined_call_operand.<no memory space> [shape: f32[1], index: 4, kind: input, shape index: {}]   ;;  %s221_s5 = inlined_call_operand.vmem [shape: f32[8,1], index: 5, kind: output, shape index: {}]  }
   0x1   :  { %s18_s20 = sshll.u32 %s216_s0, 4  ;;  %s19_s20 = int_to_ptr.hbm [resolvable:$true] %s18_s20 }
   0x2   :  { %12 = vsyncpa [#allocation6], 0  ;;  %s164_s21 = smov [#allocation3]   ;;  %s28_s25 = sshll.u32 %s217_s1, 4  ;;  %s29_s25 = int_to_ptr.hbm [resolvable:$true] %s28_s25 }
   0x3   :  { %s20_s22 = sshll.u32 %s164_s21, 4  ;;  %s165_s26 = smov [#allocation5]   ;;  %s21_s22 = int_to_ptr.vmem [resolvable:$true] %s20_s22 }
   0x4   :  { %23 = dma.hbm_to_vmem [thread:$0]  %s19_s20, 128, %s21_s22, [#allocation4]  }
   0x5   :  { %s30_s27 = sshll.u32 %s165_s26, 4  ;;  %s166_s28 = smov 128   ;;  %s31_s27 = int_to_ptr.vmem [resolvable:$true] %s30_s27 }
   0x6   :  { %s167_s29 = smov 8  }
   0x7   :  { %36 = dma.hbm_to_vmem [thread:$0]  %s29_s25, 512, %s31_s27, [#allocation6], %s166_s28, %s166_s28, %s167_s29  }
   0x8   :  { %160 = dma.done.wait [#allocation4], 128  }
   0x9   :  { %161 = vsyncadd [#allocation4], 4294967168 }
   0xa   :  { %162 = dma.done.wait [#allocation6], 512  }
   0xb   :  { %163 = vsyncadd [#allocation6], 4294966784  ;;  %v55_v0 = vld [vmem:[#allocation5 + $0x18] sm:$0xff]  ;;  %v54_v1 = vld [vmem:[#allocation5 + $0x10] sm:$0xff]  ;;  %vm60_vm0 = vcmask 261120   ;;  %vm90_vm1 = vcmask 523264   ;;  %v95_v12 = vstv %s220_s4 }
   0xc   :  { %76 = vmatpush.msra.mxu0 %v55_v0  ;;  %v53_v2 = vld [vmem:[#allocation5 + $0x8] sm:$0xff]  ;;  %v52_v3 = vld [vmem:[#allocation5] sm:$0xff]  ;;  %v51_v4 = vld [vmem:[#allocation3] sm:$0xff]  ;;  %vm97_vm2 = vcmask 7168  }
   0xd   :  { %v110_v5 = vld [vmem:[%s218_s2] ss:$0 sm:$0xff] }
   0xe   :  { %77 = vmatpush.msra.mxu0 %v54_v1  ;;  %v111_v8 = vld [vmem:[%s219_s3] ss:$0 sm:$0xff] }
  0x10   :  { %78 = vmatpush.msra.mxu0 %v53_v2 }
  0x12   :  { %79 = vmatpush.msra.mxu0 %v52_v3 }
  0x13   :  { %105 = vmatmul.msk.f32.vlgmr.msra.gmra.mxu0 %vm60_vm0, %v51_v4 }
  0x90   :  { %v81_v6 = vpop.f32.mrf.mxu0 }
  0x91   :  { %v82_v7 = vadd.f32 %v110_v5, %v81_v6 }
  0x93   :  { %v84_v9 = vmax.f32 %v82_v7, 0.0 }
  0x95   :  { %v89_v10 = vmul.f32 %v111_v8, %v84_v9 }
  0x97   :  { %v91_v11 = vsel %vm90_vm1, %v89_v10, 0.0 }
  0x98   :  { %92 = vadd.xlane.f32.xlu0 %v91_v11 }
 0x10b   :  { %v93_v13 = vpop.xlane.xlu0 %92 }
 0x10c   :  { %v96_v14 = vadd.f32 %v95_v12, %v93_v13 }
 0x10e   :  { %98 = vst.msk [vmem:[%s221_s5] sm:$0xff] %vm97_vm2, %v96_v14 }
 0x10f   :  { %103 = vsyncpa [#allocation4], 1 }
 0x110   :  { %104 = vsyncpa [#allocation6], 1 }

</bundles_post_ra>
